<compile_context>
chip_gen: v5e
topology: v5e:2x2
jax: 0.10.0
libtpu: 0.0.40
codegen_flags: <defaults>
</compile_context>

<pallas_src>
import functools

import jax
import jax.numpy as jnp
from jax.experimental import pallas as pl
from jax.experimental.pallas import tpu as pltpu


def _round_up(x, m):
    return (x + m - 1) // m * m


def _elem_loss(d, ltype):
    if ltype == "l1":
        return jnp.abs(d)
    # smooth_l1, beta = 1.0 (PyTorch default)
    ad = jnp.abs(d)
    return jnp.where(ad < 1.0, 0.5 * d * d, ad - 0.5)


def _shift_up(a, s):
    # result[:, i] = a[:, i + s]   (wrapped lanes are never read by callers)
    if s == 0:
        return a
    return jnp.concatenate([a[:, s:], a[:, :s]], axis=1)


def _shift_dn(a, s):
    # result[:, i] = a[:, i - s]
    if s == 0:
        return a
    w = a.shape[1]
    return jnp.concatenate([a[:, w - s:], a[:, :w - s]], axis=1)


def _fold_tree(a, op, npts):
    # Segmented parity fold: with segment width S = 2*npts, lane g*S ends up
    # holding op-reduce over that segment's even lanes (x coords) and lane
    # g*S+1 over its odd lanes (y coords).  Works for arbitrary npts (the last
    # fold overlaps; min/max are idempotent) and the lanes consumed downstream
    # never see data from a neighbouring segment.
    cov = 1
    while cov < npts:
        m = min(cov, npts - cov)
        a = op(a, _shift_up(a, 2 * m))
        cov += m
    return a


def _det_loss_kernel(pred_ref, gt_ref, out_ref, *, ltype, mode, seg, npts,
                     valid_rows):
    rows = gt_ref.shape[0]
    gt = gt_ref[...]
    pred = pred_ref[...]

    # Mask rows of the (possibly partial) last tile that are past the data.
    row_idx = (pl.program_id(0) * rows
               + jax.lax.broadcasted_iota(jnp.int32, (rows, 1), 0))
    row_ok = row_idx < valid_rows

    if mode == "direct":
        # ptype == 1: elementwise loss against the raw polygon points.
        loss = _elem_loss(pred - gt, ltype)

    elif mode == "box_packed":
        w = gt.shape[1]
        g_per_row = w // seg
        lane = jax.lax.broadcasted_iota(jnp.int32, (1, w), 1)   # row-invariant
        minT = _fold_tree(gt, jnp.minimum, npts)
        maxT = _fold_tree(gt, jnp.maximum, npts)
        # Box corners at lanes g*seg + [0..3] = [min_x, min_y, max_x, max_y].
        box = jnp.where((lane % seg) < 2, minT, _shift_dn(maxT, 2))
        # Compact the corner quadruples from stride `seg` to stride 4 so they
        # line up lane-for-lane with the lane-dense packed pred tile.
        boxd = box
        for g in range(1, g_per_row):
            sel = (lane >= 4 * g) & (lane < 4 * (g + 1))
            boxd = jnp.where(sel, _shift_up(box, g * (seg - 4)), boxd)
        boxd = boxd[:, :4 * g_per_row]                      # (rows, 4G)
        loss = _elem_loss(pred - boxd, ltype)               # (rows, 4G)

    else:  # "box": one box per row, masked last-axis reduces (2P > 64 case).
        lane = jax.lax.broadcasted_iota(jnp.int32, (1, gt.shape[1]), 1)
        is_x = (lane % 2) == 0
        pinf = jnp.float32(jnp.inf)
        mn_x = jnp.min(jnp.where(is_x, gt, pinf), axis=1, keepdims=True)
        mn_y = jnp.min(jnp.where(is_x, pinf, gt), axis=1, keepdims=True)
        mx_x = jnp.max(jnp.where(is_x, gt, -pinf), axis=1, keepdims=True)
        mx_y = jnp.max(jnp.where(is_x, -pinf, gt), axis=1, keepdims=True)
        loss = (_elem_loss(pred[:, 0:1] - mn_x, ltype)
                + _elem_loss(pred[:, 1:2] - mn_y, ltype)
                + _elem_loss(pred[:, 2:3] - mx_x, ltype)
                + _elem_loss(pred[:, 3:4] - mx_y, ltype))   # (rows, 1)

    loss = jnp.where(row_ok, loss, 0.0)      # discards garbage rows (incl. NaN)
    # Keep lane-wise partials (better f32 accumulation); the sublane reduce is
    # mostly VPU work and the (1, out_w) store is lane-dense and tiny.
    out_ref[...] = jnp.sum(loss, axis=0, keepdims=True)[None]


def det_loss(pred_polys, gt_polys, ct_ind=None, *, ltype="l1", ptype=2,
             tile_rows=None):
    """Pallas implementation of DetLoss.forward.

    ptype 2/3: pred_polys (N,2,2), gt_polys (N,P,2) -> mean loss vs min/max box.
    ptype 1:   pred_polys (N,P,2), gt_polys (N,P,2) -> mean elementwise loss.
    ct_ind is accepted for API parity and unused (matches the reference).
    """
    if ltype not in ("l1", "smooth_l1"):
        raise ValueError("No consistent type of Loss!")
    if ptype not in (1, 2, 3):
        raise ValueError("No consistent type of Points!")
    del ct_ind

    n, p, two = gt_polys.shape
    assert two == 2, gt_polys.shape
    seg = 2 * p

    # Free (contiguous) reshapes only — no HBM round-trip transpose.
    gt_flat = gt_polys.astype(jnp.float32).reshape(n, seg)
    if ptype == 1:
        assert pred_polys.shape == gt_polys.shape, (pred_polys.shape, gt_polys.shape)
        pred_flat = pred_polys.astype(jnp.float32).reshape(n, seg)
        n_elems = n * seg
    else:
        assert pred_polys.shape == (n, 2, 2), pred_polys.shape
        pred_flat = pred_polys.astype(jnp.float32).reshape(n, 4)
        n_elems = 4 * n

    # ---- lane-dense packing: G boxes per (<=128)-lane row (free reshape) ----
    g_max = 128 // seg if seg <= 64 else 1
    gpack = 1
    for g in range(min(g_max, n), 1, -1):
        if n % g == 0:
            gpack = g
            break
    if ptype == 1:
        packed = gpack >= 2
        mode = "direct"
    else:
        packed = gpack >= 2 and seg >= 4
        mode = "box_packed" if packed else "box"
    if packed:
        r_total = n // gpack
        gt_in = gt_flat.reshape(r_total, gpack * seg)
        pred_in = pred_flat.reshape(r_total, pred_flat.shape[1] * gpack)
    else:
        gpack = 1
        r_total = n
        gt_in, pred_in = gt_flat, pred_flat
    # Tiny pad so even very small inputs fill one 8-row block (pred/gt are
    # small here; padded rows are masked in-kernel).
    if r_total < 8:
        pad = 8 - r_total
        gt_in = jnp.pad(gt_in, ((0, pad), (0, 0)))
        pred_in = jnp.pad(pred_in, ((0, pad), (0, 0)))
    gt_w = gt_in.shape[1]
    pred_w = pred_in.shape[1]
    if mode == "direct":
        out_w = gt_w
    elif mode == "box_packed":
        out_w = 4 * gpack
    else:
        out_w = 1

    # ---- generation-aware VMEM budget / tile sizing --------------------------
    try:
        phys_vmem = int(pltpu.get_tpu_info().vmem_capacity_bytes)
    except Exception:
        phys_vmem = 64 * 1024 * 1024                 # v7x-safe default
    vmem_limit = min(phys_vmem * 3 // 4, 96 * 1024 * 1024)   # 48 MiB (v7x) / 96 MiB
    in_budget = vmem_limit - 4 * 1024 * 1024                  # headroom

    def _lane_pad_bytes(w):
        return _round_up(w, 128) * 4

    # 2 double-buffered inputs + ~8 live full-width in-kernel temporaries.
    bytes_per_row = (2 * (_lane_pad_bytes(gt_w) + _lane_pad_bytes(pred_w))
                     + 8 * _lane_pad_bytes(gt_w))
    rows_cap = max(8, min(8192, (in_budget // bytes_per_row) // 8 * 8))

    r_padded = _round_up(r_total, 8)
    if r_padded >= 16:
        # >= 2 grid steps so the "parallel" axis can feed both v7x TensorCores.
        rows = min(rows_cap, _round_up(pl.cdiv(r_total, 2), 8))
    else:
        rows = 8
    if tile_rows is not None:
        rows = max(8, _round_up(min(int(tile_rows), rows), 8))
    num_tiles = pl.cdiv(r_total, rows)

    partials = pl.pallas_call(
        functools.partial(_det_loss_kernel, ltype=ltype, mode=mode, seg=seg,
                          npts=p, valid_rows=r_total),
        grid=(num_tiles,),
        in_specs=[
            pl.BlockSpec((rows, pred_w), lambda i: (i, 0)),
            pl.BlockSpec((rows, gt_w), lambda i: (i, 0)),
        ],
        # Per-tile lane-dense partial sums; last two block dims equal the full
        # array dims (layout-rule safe), leading dim indexes the tile.
        out_specs=pl.BlockSpec((1, 1, out_w), lambda i: (i, 0, 0)),
        out_shape=jax.ShapeDtypeStruct((num_tiles, 1, out_w), jnp.float32),
        compiler_params=pltpu.CompilerParams(
            dimension_semantics=("parallel",),
            vmem_limit_bytes=int(vmem_limit),
        ),
    )(pred_in, gt_in)

    # Single final scale: mean over all compared elements.
    return jnp.sum(partials) * (1.0 / float(n_elems))


def _reference(pred_polys, gt_polys, *, ltype="l1", ptype=2):
    # Pure-JAX reference of the PyTorch forward.
    if ptype == 1:
        tgt = gt_polys
    else:
        mn = jnp.min(gt_polys, axis=1, keepdims=True)
        mx = jnp.max(gt_polys, axis=1, keepdims=True)
        tgt = jnp.concatenate([mn, mx], axis=1)          # (N, 2, 2)
    d = pred_polys - tgt
    if ltype == "l1":
        e = jnp.abs(d)
    else:
        ad = jnp.abs(d)
        e = jnp.where(ad < 1.0, 0.5 * d * d, ad - 0.5)
    return jnp.mean(e)


if __name__ == "__main__":
    key = jax.random.PRNGKey(0)
    ks = jax.random.split(key, 10)

    def check(out, ref, tag):
        assert jnp.allclose(out, ref, atol=1e-5, rtol=1e-5), (tag, out, ref)

    # 1) packed fast path (P power of two, G=4, W=128), single tile, l1.
    N, P = 8, 16
    pred = jax.random.normal(ks[0], (N, 2, 2), dtype=jnp.float32)
    gt = jax.random.normal(ks[1], (N, P, 2), dtype=jnp.float32) * 4.0
    ct = jnp.arange(N, dtype=jnp.int32)
    out = det_loss(pred, gt, ct, ltype="l1", ptype=2)
    jax.block_until_ready(out)
    check(out, _reference(pred, gt, ltype="l1"), "packed/l1")

    # 2) packed path, non-power-of-two P (overlapping final fold), G=5 (W=120),
    #    two grid tiles with a masked partial last tile, smooth_l1, ptype=3.
    N2, P2 = 50, 12
    pred2 = jax.random.normal(ks[2], (N2, 2, 2), dtype=jnp.float32)
    gt2 = jax.random.normal(ks[3], (N2, P2, 2), dtype=jnp.float32) * 4.0
    out2 = det_loss(pred2, gt2, None, ltype="smooth_l1", ptype=3)
    jax.block_until_ready(out2)
    check(out2, _reference(pred2, gt2, ltype="smooth_l1"), "packed/smooth_l1")

    # 3) unpacked box path (2P > 64), 3 grid tiles via the tile_rows override.
    N3, P3 = 20, 72
    pred3 = jax.random.normal(ks[4], (N3, 2, 2), dtype=jnp.float32)
    gt3 = jax.random.normal(ks[5], (N3, P3, 2), dtype=jnp.float32) * 4.0
    out3 = det_loss(pred3, gt3, None, ltype="l1", ptype=2, tile_rows=8)
    jax.block_until_ready(out3)
    check(out3, _reference(pred3, gt3, ltype="l1"), "unpacked/l1")

    # 4) packed path with a non-128 packed width (G=7, W=112), tiny N padded
    #    up to one 8-row block.
    N4, P4 = 7, 8
    pred4 = jax.random.normal(ks[6], (N4, 2, 2), dtype=jnp.float32)
    gt4 = jax.random.normal(ks[7], (N4, P4, 2), dtype=jnp.float32) * 4.0
    out4 = det_loss(pred4, gt4, None, ltype="smooth_l1", ptype=2)
    jax.block_until_ready(out4)
    check(out4, _reference(pred4, gt4, ltype="smooth_l1"), "packed/W=112")

    # 5) ptype=1 direct elementwise path (packed to a 128-lane row).
    N5, P5 = 16, 32
    pred5 = jax.random.normal(ks[8], (N5, P5, 2), dtype=jnp.float32)
    gt5 = jax.random.normal(ks[9], (N5, P5, 2), dtype=jnp.float32) * 4.0
    out5 = det_loss(pred5, gt5, None, ltype="l1", ptype=1)
    jax.block_until_ready(out5)
    check(out5, _reference(pred5, gt5, ltype="l1", ptype=1), "direct/ptype1")

    print("KERNEL_OK")
</pallas_src>

<mosaic_0001>
module attributes {stable_mosaic.version = 11 : i64} {
  func.func @_det_loss_kernel(%arg0: i32, %arg1: memref<8x16xf32, #tpu.memory_space<vmem>>, %arg2: memref<8x128xf32, #tpu.memory_space<vmem>>, %arg3: memref<1x1x16xf32, #tpu.memory_space<vmem>>) attributes {dimension_semantics = [#tpu.dimension_semantics<parallel>], iteration_bounds = array<i64: 1>, scalar_prefetch = 0 : i64, scratch_operands = 0 : i64, tpu.core_type = #tpu.core_type<tc>, window_params = [{transform_indices = @transform_0, window_bounds = array<i64: 8, 16>}, {transform_indices = @transform_1, window_bounds = array<i64: 8, 128>}, {transform_indices = @transform_2, window_bounds = array<i64: 1, 1, 16>}]} {
    %c0 = arith.constant 0 : index
    %c0_0 = arith.constant 0 : index
    %0 = vector.load %arg2[%c0, %c0_0] : memref<8x128xf32, #tpu.memory_space<vmem>>, vector<8x128xf32>
    %c0_1 = arith.constant 0 : index
    %c0_2 = arith.constant 0 : index
    %1 = vector.load %arg1[%c0_1, %c0_2] : memref<8x16xf32, #tpu.memory_space<vmem>>, vector<8x16xf32>
    %c8_i32 = arith.constant 8 : i32
    %2 = arith.muli %arg0, %c8_i32 : i32
    %3 = tpu.iota {dimensions = array<i32: 0>} : vector<8x1xi32>
    %4 = vector.broadcast %2 : i32 to vector<8x1xi32>
    %5 = arith.addi %4, %3 : vector<8x1xi32>
    %c2_i32 = arith.constant 2 : i32
    %6 = vector.broadcast %c2_i32 : i32 to vector<8x1xi32>
    %7 = arith.cmpi slt, %5, %6 : vector<8x1xi32>
    %8 = tpu.iota {dimensions = array<i32: 1>} : vector<1x128xi32>
    %9 = vector.extract_strided_slice %0 {offsets = [0, 2], sizes = [8, 126], strides = [1, 1]} : vector<8x128xf32> to vector<8x126xf32>
    %10 = vector.extract_strided_slice %0 {offsets = [0, 0], sizes = [8, 2], strides = [1, 1]} : vector<8x128xf32> to vector<8x2xf32>
    %11 = tpu.concatenate %9, %10 in 1 : vector<8x126xf32>, vector<8x2xf32> -> vector<8x128xf32>
    %12 = arith.minimumf %0, %11 : vector<8x128xf32>
    %13 = vector.extract_strided_slice %12 {offsets = [0, 4], sizes = [8, 124], strides = [1, 1]} : vector<8x128xf32> to vector<8x124xf32>
    %14 = vector.extract_strided_slice %12 {offsets = [0, 0], sizes = [8, 4], strides = [1, 1]} : vector<8x128xf32> to vector<8x4xf32>
    %15 = tpu.concatenate %13, %14 in 1 : vector<8x124xf32>, vector<8x4xf32> -> vector<8x128xf32>
    %16 = arith.minimumf %12, %15 : vector<8x128xf32>
    %17 = vector.extract_strided_slice %16 {offsets = [0, 8], sizes = [8, 120], strides = [1, 1]} : vector<8x128xf32> to vector<8x120xf32>
    %18 = vector.extract_strided_slice %16 {offsets = [0, 0], sizes = [8, 8], strides = [1, 1]} : vector<8x128xf32> to vector<8x8xf32>
    %19 = tpu.concatenate %17, %18 in 1 : vector<8x120xf32>, vector<8x8xf32> -> vector<8x128xf32>
    %20 = arith.minimumf %16, %19 : vector<8x128xf32>
    %21 = vector.extract_strided_slice %20 {offsets = [0, 16], sizes = [8, 112], strides = [1, 1]} : vector<8x128xf32> to vector<8x112xf32>
    %22 = vector.extract_strided_slice %20 {offsets = [0, 0], sizes = [8, 16], strides = [1, 1]} : vector<8x128xf32> to vector<8x16xf32>
    %23 = tpu.concatenate %21, %22 in 1 : vector<8x112xf32>, vector<8x16xf32> -> vector<8x128xf32>
    %24 = arith.minimumf %20, %23 : vector<8x128xf32>
    %25 = vector.extract_strided_slice %0 {offsets = [0, 2], sizes = [8, 126], strides = [1, 1]} : vector<8x128xf32> to vector<8x126xf32>
    %26 = vector.extract_strided_slice %0 {offsets = [0, 0], sizes = [8, 2], strides = [1, 1]} : vector<8x128xf32> to vector<8x2xf32>
    %27 = tpu.concatenate %25, %26 in 1 : vector<8x126xf32>, vector<8x2xf32> -> vector<8x128xf32>
    %28 = arith.maximumf %0, %27 : vector<8x128xf32>
    %29 = vector.extract_strided_slice %28 {offsets = [0, 4], sizes = [8, 124], strides = [1, 1]} : vector<8x128xf32> to vector<8x124xf32>
    %30 = vector.extract_strided_slice %28 {offsets = [0, 0], sizes = [8, 4], strides = [1, 1]} : vector<8x128xf32> to vector<8x4xf32>
    %31 = tpu.concatenate %29, %30 in 1 : vector<8x124xf32>, vector<8x4xf32> -> vector<8x128xf32>
    %32 = arith.maximumf %28, %31 : vector<8x128xf32>
    %33 = vector.extract_strided_slice %32 {offsets = [0, 8], sizes = [8, 120], strides = [1, 1]} : vector<8x128xf32> to vector<8x120xf32>
    %34 = vector.extract_strided_slice %32 {offsets = [0, 0], sizes = [8, 8], strides = [1, 1]} : vector<8x128xf32> to vector<8x8xf32>
    %35 = tpu.concatenate %33, %34 in 1 : vector<8x120xf32>, vector<8x8xf32> -> vector<8x128xf32>
    %36 = arith.maximumf %32, %35 : vector<8x128xf32>
    %37 = vector.extract_strided_slice %36 {offsets = [0, 16], sizes = [8, 112], strides = [1, 1]} : vector<8x128xf32> to vector<8x112xf32>
    %38 = vector.extract_strided_slice %36 {offsets = [0, 0], sizes = [8, 16], strides = [1, 1]} : vector<8x128xf32> to vector<8x16xf32>
    %39 = tpu.concatenate %37, %38 in 1 : vector<8x112xf32>, vector<8x16xf32> -> vector<8x128xf32>
    %40 = arith.maximumf %36, %39 : vector<8x128xf32>
    %c32_i32 = arith.constant 32 : i32
    %c0_i32 = arith.constant 0 : i32
    %41 = arith.cmpi eq, %c32_i32, %c0_i32 : i32
    %c1_i32 = arith.constant 1 : i32
    %42 = arith.select %41, %c1_i32, %c32_i32 : i32
    %43 = vector.broadcast %42 : i32 to vector<1x128xi32>
    %44 = arith.remsi %8, %43 : vector<1x128xi32>
    %c0_i32_3 = arith.constant 0 : i32
    %45 = vector.broadcast %c0_i32_3 : i32 to vector<1x128xi32>
    %46 = arith.cmpi ne, %44, %45 : vector<1x128xi32>
    %c0_i32_4 = arith.constant 0 : i32
    %47 = vector.broadcast %c0_i32_4 : i32 to vector<1x128xi32>
    %48 = arith.cmpi slt, %44, %47 : vector<1x128xi32>
    %c0_i32_5 = arith.constant 0 : i32
    %49 = arith.cmpi slt, %42, %c0_i32_5 : i32
    %50 = vector.broadcast %49 : i1 to vector<1x128xi1>
    %51 = vector.broadcast %50 : vector<1x128xi1> to vector<1x128xi1>
    %52 = arith.xori %48, %51 : vector<1x128xi1>
    %53 = arith.andi %52, %46 : vector<1x128xi1>
    %54 = vector.broadcast %42 : i32 to vector<1x128xi32>
    %55 = arith.addi %44, %54 : vector<1x128xi32>
    %56 = arith.select %53, %55, %44 : vector<1x128xi1>, vector<1x128xi32>
    %c2_i32_6 = arith.constant 2 : i32
    %57 = vector.broadcast %c2_i32_6 : i32 to vector<1x128xi32>
    %58 = arith.cmpi slt, %56, %57 : vector<1x128xi32>
    %59 = vector.extract_strided_slice %40 {offsets = [0, 126], sizes = [8, 2], strides = [1, 1]} : vector<8x128xf32> to vector<8x2xf32>
    %60 = vector.extract_strided_slice %40 {offsets = [0, 0], sizes = [8, 126], strides = [1, 1]} : vector<8x128xf32> to vector<8x126xf32>
    %61 = tpu.concatenate %59, %60 in 1 : vector<8x2xf32>, vector<8x126xf32> -> vector<8x128xf32>
    %62 = vector.shape_cast %58 : vector<1x128xi1> to vector<1x128xi1>
    %63 = vector.broadcast %62 : vector<1x128xi1> to vector<8x128xi1>
    %64 = arith.select %63, %24, %61 : vector<8x128xi1>, vector<8x128xf32>
    %c4_i32 = arith.constant 4 : i32
    %65 = vector.broadcast %c4_i32 : i32 to vector<1x128xi32>
    %66 = arith.cmpi sge, %8, %65 : vector<1x128xi32>
    %c8_i32_7 = arith.constant 8 : i32
    %67 = vector.broadcast %c8_i32_7 : i32 to vector<1x128xi32>
    %68 = arith.cmpi slt, %8, %67 : vector<1x128xi32>
    %69 = arith.andi %66, %68 : vector<1x128xi1>
    %70 = vector.extract_strided_slice %64 {offsets = [0, 28], sizes = [8, 100], strides = [1, 1]} : vector<8x128xf32> to vector<8x100xf32>
    %71 = vector.extract_strided_slice %64 {offsets = [0, 0], sizes = [8, 28], strides = [1, 1]} : vector<8x128xf32> to vector<8x28xf32>
    %72 = tpu.concatenate %70, %71 in 1 : vector<8x100xf32>, vector<8x28xf32> -> vector<8x128xf32>
    %73 = vector.shape_cast %69 : vector<1x128xi1> to vector<1x128xi1>
    %74 = vector.broadcast %73 : vector<1x128xi1> to vector<8x128xi1>
    %75 = arith.select %74, %72, %64 : vector<8x128xi1>, vector<8x128xf32>
    %c8_i32_8 = arith.constant 8 : i32
    %76 = vector.broadcast %c8_i32_8 : i32 to vector<1x128xi32>
    %77 = arith.cmpi sge, %8, %76 : vector<1x128xi32>
    %c12_i32 = arith.constant 12 : i32
    %78 = vector.broadcast %c12_i32 : i32 to vector<1x128xi32>
    %79 = arith.cmpi slt, %8, %78 : vector<1x128xi32>
    %80 = arith.andi %77, %79 : vector<1x128xi1>
    %81 = vector.extract_strided_slice %64 {offsets = [0, 56], sizes = [8, 72], strides = [1, 1]} : vector<8x128xf32> to vector<8x72xf32>
    %82 = vector.extract_strided_slice %64 {offsets = [0, 0], sizes = [8, 56], strides = [1, 1]} : vector<8x128xf32> to vector<8x56xf32>
    %83 = tpu.concatenate %81, %82 in 1 : vector<8x72xf32>, vector<8x56xf32> -> vector<8x128xf32>
    %84 = vector.shape_cast %80 : vector<1x128xi1> to vector<1x128xi1>
    %85 = vector.broadcast %84 : vector<1x128xi1> to vector<8x128xi1>
    %86 = arith.select %85, %83, %75 : vector<8x128xi1>, vector<8x128xf32>
    %c12_i32_9 = arith.constant 12 : i32
    %87 = vector.broadcast %c12_i32_9 : i32 to vector<1x128xi32>
    %88 = arith.cmpi sge, %8, %87 : vector<1x128xi32>
    %c16_i32 = arith.constant 16 : i32
    %89 = vector.broadcast %c16_i32 : i32 to vector<1x128xi32>
    %90 = arith.cmpi slt, %8, %89 : vector<1x128xi32>
    %91 = arith.andi %88, %90 : vector<1x128xi1>
    %92 = vector.extract_strided_slice %64 {offsets = [0, 84], sizes = [8, 44], strides = [1, 1]} : vector<8x128xf32> to vector<8x44xf32>
    %93 = vector.extract_strided_slice %64 {offsets = [0, 0], sizes = [8, 84], strides = [1, 1]} : vector<8x128xf32> to vector<8x84xf32>
    %94 = tpu.concatenate %92, %93 in 1 : vector<8x44xf32>, vector<8x84xf32> -> vector<8x128xf32>
    %95 = vector.shape_cast %91 : vector<1x128xi1> to vector<1x128xi1>
    %96 = vector.broadcast %95 : vector<1x128xi1> to vector<8x128xi1>
    %97 = arith.select %96, %94, %86 : vector<8x128xi1>, vector<8x128xf32>
    %98 = vector.extract_strided_slice %97 {offsets = [0, 0], sizes = [8, 16], strides = [1, 1]} : vector<8x128xf32> to vector<8x16xf32>
    %99 = arith.subf %1, %98 : vector<8x16xf32>
    %100 = math.absf %99 : vector<8x16xf32>
    %cst = arith.constant 0.000000e+00 : f32
    %101 = vector.shape_cast %7 : vector<8x1xi1> to vector<8x1xi1>
    %102 = vector.broadcast %101 : vector<8x1xi1> to vector<8x16xi1>
    %103 = vector.broadcast %cst : f32 to vector<8x16xf32>
    %104 = arith.select %102, %100, %103 : vector<8x16xi1>, vector<8x16xf32>
    %cst_10 = arith.constant dense<0.000000e+00> : vector<16xf32>
    %105 = vector.multi_reduction <add>, %104, %cst_10 [0] : vector<8x16xf32> to vector<16xf32>
    %106 = vector.shape_cast %105 : vector<16xf32> to vector<1x16xf32>
    %107 = vector.shape_cast %106 : vector<1x16xf32> to vector<1x1x16xf32>
    %c0_11 = arith.constant 0 : index
    %c0_12 = arith.constant 0 : index
    %c0_13 = arith.constant 0 : index
    %108 = vector.load %arg3[%c0_11, %c0_12, %c0_13] : memref<1x1x16xf32, #tpu.memory_space<vmem>>, vector<1x1x16xf32>
    tpu.vector_store %arg3[%c0_11, %c0_12, %c0_13], %107 {strides = array<i32>} : memref<1x1x16xf32, #tpu.memory_space<vmem>>, vector<1x1x16xf32>,
    return
  }
  func.func @transform_0(%arg0: i32) -> (i32, i32) {
    %c0_i32 = arith.constant 0 : i32
    %c0_i32_0 = arith.constant 0 : i32
    return %arg0, %c0_i32 : i32, i32
  }
  func.func @transform_1(%arg0: i32) -> (i32, i32) {
    %c0_i32 = arith.constant 0 : i32
    %c0_i32_0 = arith.constant 0 : i32
    return %arg0, %c0_i32 : i32, i32
  }
  func.func @transform_2(%arg0: i32) -> (i32, i32, i32) {
    %c0_i32 = arith.constant 0 : i32
    %c0_i32_0 = arith.constant 0 : i32
    %c0_i32_1 = arith.constant 0 : i32
    return %arg0, %c0_i32, %c0_i32_0 : i32, i32, i32
  }
}

</mosaic_0001>

<bundles_post_ra>
// kernel: tpu_custom_call.1
= control target key start
LH: loop header
LB: loop body
LE: loop exit
PB: predicated region body
PF: predicated region fallthrough
CT: control target
= control target key end

     0   :  { %7 = vsyncpa [#allocation3], 0  ;;  %s291_s0 = inlined_call_operand.hbm [shape: f32[8,16], index: 0, kind: input, shape index: {}]   ;;  %s292_s1 = inlined_call_operand.hbm [shape: f32[8,128], index: 1, kind: input, shape index: {}]   ;;  %s293_s2 = inlined_call_operand.hbm [shape: f32[1,1,16], index: 2, kind: output, shape index: {}]  }
   0x1   :  { %8 = vsyncpa [#allocation6], 0 }
   0x2   :  { %9 = vsyncpa [#allocation4], 0  ;;  %s15_s11 = sshll.u32 %s291_s0, 4  ;;  %s256_s12 = smov [#allocation2]   ;;  %s16_s11 = int_to_ptr.hbm [resolvable:$true] %s15_s11 }
   0x3   :  { %s17_s13 = sshll.u32 %s256_s12, 4  ;;  %s26_s16 = sshll.u32 %s292_s1, 4  ;;  %s18_s13 = int_to_ptr.vmem [resolvable:$true] %s17_s13  ;;  %s27_s16 = int_to_ptr.hbm [resolvable:$true] %s26_s16 }
   0x4   :  { %20 = dma.hbm_to_vmem [thread:$0]  %s16_s11, 128, %s18_s13, [#allocation3]  }
   0x5   :  { %s257_s17 = smov [#allocation5]  }
   0x6   :  { %s28_s18 = sshll.u32 %s257_s17, 4  ;;  %s29_s18 = int_to_ptr.vmem [resolvable:$true] %s28_s18 }
   0x7   :  { %31 = dma.hbm_to_vmem [thread:$0]  %s27_s16, 128, %s29_s18, [#allocation6]  }
   0x8   :  { %250 = dma.done.wait [#allocation3], 128  }
   0x9   :  { %251 = vsyncadd [#allocation3], 4294967168 }
   0xa   :  { %252 = dma.done.wait [#allocation6], 128  }
   0xb   :  { %253 = vsyncadd [#allocation6], 4294967168  ;;  %v40_v0 = vld [vmem:[#allocation5] sm:$0xff]  ;;  %s258_s0 = smov 126   ;;  %s259_s19 = smov 124   ;;  %v43_v14 = vlaneseq  ;;  %v41_v24 = vld [vmem:[#allocation2] sm:$0xff] }
   0xc   :  { %51 = vrot.lane.b32.xlu0 %v40_v0, %s258_s0  ;;  %s260_s1 = smov 120   ;;  %s261_s20 = smov 112   ;;  %vm139_vm11 = vcmask 130048   ;;  %vm147_vm12 = vcmask 122880  }
   0xd   :  { %s262_s21 = smov 2   ;;  %v49_v15 = vand.u32 127, %v43_v14  ;;  %s263_s22 = smov 44   ;;  %v44_v25 = vshrl.u32 %v43_v14, 7 }
   0xe   :  { %s264_s23 = smov 72   ;;  %s265_s24 = smov 100  }
   0xf   :  { %v90_v16 = vand.u32 31, %v49_v15  ;;  %vm106_vm1 = vcmp.ge.s32.totalorder %v49_v15, 4  ;;  %vm107_vm2 = vcmp.lt.s32.totalorder %v49_v15, 8  ;;  %vm116_vm3 = vcmp.ge.s32.totalorder %v49_v15, 8  ;;  %s266_s25 = smov [#allocation7]   ;;  %s156_s29 = sshll.u32 %s293_s2, 4  ;;  %s157_s29 = int_to_ptr.hbm [resolvable:$true] %s156_s29 }
  0x10   :  { %vm117_vm4 = vcmp.lt.s32.totalorder %v49_v15, 12  ;;  %vm125_vm5 = vcmp.ge.s32.totalorder %v49_v15, 12  ;;  %vm126_vm6 = vcmp.lt.s32.totalorder %v49_v15, 16  ;;  %vm108_vm7 = vmand %vm106_vm1, %vm107_vm2  ;;  %vm47_vm10 = vcmp.lt.s32.totalorder %v44_v25, 2  ;;  %s154_s26 = sshll.u32 %s266_s25, 4  ;;  %s155_s26 = int_to_ptr.vmem [resolvable:$true] %s154_s26 }
  0x11   :  { %vm98_vm0 = vcmp.lt.s32.totalorder %v90_v16, 2  ;;  %vm118_vm8 = vmand %vm116_vm3, %vm117_vm4 }
  0x12   :  { %vm127_vm9 = vmand %vm125_vm5, %vm126_vm6 }
  0x7e   :  { %v52_v1 = vpop.permute.xlu0 %51 }
  0x7f   :  { %v70_v2 = vmax.f32 %v40_v0, %v52_v1  ;;  %v54_v3 = vmin.f32 %v40_v0, %v52_v1 }
  0x81   :  { %72 = vrot.lane.b32.xlu0 %v70_v2, %s259_s19  ;;  %56 = vrot.lane.b32.xlu1 %v54_v3, %s259_s19 }
  0xf3   :  { %v73_v4 = vpop.permute.xlu0 %72  ;;  %v57_v5 = vpop.permute.xlu1 %56 }
  0xf4   :  { %v75_v6 = vmax.f32 %v70_v2, %v73_v4  ;;  %v59_v7 = vmin.f32 %v54_v3, %v57_v5 }
  0xf6   :  { %77 = vrot.lane.b32.xlu1 %v75_v6, %s260_s1  ;;  %61 = vrot.lane.b32.xlu2 %v59_v7, %s260_s1 }
 0x150   :  { %v62_v8 = vpop.permute.xlu2 %61 }
 0x151   :  { %v64_v9 = vmin.f32 %v59_v7, %v62_v8 }
 0x153   :  { %66 = vrot.lane.b32.xlu0 %v64_v9, %s261_s20 }
 0x168   :  { %v78_v10 = vpop.permute.xlu1 %77 }
 0x169   :  { %v80_v11 = vmax.f32 %v75_v6, %v78_v10 }
 0x16b   :  { %82 = vrot.lane.b32.xlu2 %v80_v11, %s261_s20 }
 0x1c5   :  { %v83_v12 = vpop.permute.xlu2 %82  ;;  %v67_v17 = vpop.permute.xlu0 %66 }
 0x1c6   :  { %v85_v13 = vmax.f32 %v80_v11, %v83_v12  ;;  %v69_v18 = vmin.f32 %v64_v9, %v67_v17 }
 0x1c8   :  { %100 = vrot.lane.b32.xlu1 %v85_v13, %s262_s21 }
 0x23a   :  { %v101_v19 = vpop.permute.xlu1 %100 }
 0x23b   :  { %v105_v20 = vsel %vm98_vm0, %v69_v18, %v101_v19 }
 0x23c   :  { %128 = vrot.lane.b32.xlu1 %v105_v20, %s263_s22  ;;  %119 = vrot.lane.b32.xlu0 %v105_v20, %s264_s23 }
 0x23d   :  { %110 = vrot.lane.b32.xlu2 %v105_v20, %s265_s24 }
 0x297   :  { %v111_v21 = vpop.permute.xlu2 %110 }
 0x298   :  { %v115_v22 = vsel %vm108_vm7, %v111_v21, %v105_v20 }
 0x2ae   :  { %v129_v23 = vpop.permute.xlu1 %128  ;;  %v120_v26 = vpop.permute.xlu0 %119 }
 0x2af   :  { %v124_v27 = vsel %vm118_vm8, %v120_v26, %v115_v22 }
 0x2b0   :  { %v133_v28 = vsel %vm127_vm9, %v129_v23, %v124_v27 }
 0x2b1   :  { %v134_v29 = vsub.f32 %v41_v24, %v133_v28 }
 0x2b3   :  { %v135_v30 = vand.u32 2147483647, %v134_v29 }
 0x2b5   :  { %v138_v31 = vsel %vm47_vm10, %v135_v30, 0.0 }
 0x2b6   :  { %v140_v32 = vsel %vm139_vm11, %v138_v31, 0.0 }
 0x2b7   :  { %v141_v33 = vrot.slane %v140_v32, 4 }
 0x2b9   :  { %v142_v34 = vadd.f32 %v141_v33, %v140_v32 }
 0x2bb   :  { %v143_v35 = vrot.slane %v142_v34, 2 }
 0x2bd   :  { %v144_v36 = vadd.f32 %v143_v35, %v142_v34 }
 0x2bf   :  { %v145_v37 = vrot.slane %v144_v36, 1 }
 0x2c1   :  { %v146_v38 = vadd.f32 %v145_v37, %v144_v36 }
 0x2c3   :  { %148 = vst.msk [vmem:[#allocation7] sm:$0x1] %vm147_vm12, %v146_v38 }
 0x2c4   :  { %159 = dma.vmem_to_hbm [thread:$0]  %s155_s26, 16, %s157_s29, [#allocation4]  }
 0x2c5   :  { %254 = dma.done.wait [#allocation4], 16  }
 0x2c6   :  { %255 = vsyncadd [#allocation4], 4294967280 }
 0x2c7   :  { %164 = vsyncpa [#allocation3], 1 }
 0x2c8   :  { %165 = vsyncpa [#allocation6], 1 }
 0x2c9   :  { %166 = vsyncpa [#allocation4], 1 }

</bundles_post_ra>
